<compile_context>
chip_gen: v6e
topology: v6e:2x2x1
jax: 0.10.0
libtpu: 0.0.40
codegen_flags: <defaults>
</compile_context>

<pallas_src>
import jax
import jax.numpy as jnp
from jax.experimental import pallas as pl
from jax.experimental.pallas import tpu as pltpu


def _constant_kernel(const_ref, out_ref):
    # const_ref: (1, F) VMEM tile (same tile every grid step)
    # out_ref:   (NB, F) VMEM tile covering NB batch rows
    out_ref[...] = jnp.broadcast_to(const_ref[...], out_ref.shape)


def _choose_batch_block(n, feat, itemsize, target_bytes=2 << 20):
    """Pick NB rows per grid step: ~target_bytes per output buffer.

    Returns either the full batch (legal block == full dim) or a multiple of
    8 (legal sublane tiling), never exceeding n.
    """
    rows = max(1, target_bytes // max(1, feat * itemsize))
    if rows >= n:
        return n
    rows = max(8, (rows // 8) * 8)
    return min(rows, n)


def constant_forward(const, batch_size):
    """Broadcast const (1, *output_sizes) to (batch_size, *output_sizes)."""
    out_sizes = const.shape[1:]
    feat = 1
    for d in out_sizes:
        feat *= d

    # Lane-dense flat view of the constant: (1, F).
    const_flat = const.reshape(1, feat)
    itemsize = jnp.dtype(const_flat.dtype).itemsize

    nb = _choose_batch_block(batch_size, feat, itemsize)
    grid = (pl.cdiv(batch_size, nb),)

    out_flat = pl.pallas_call(
        _constant_kernel,
        out_shape=jax.ShapeDtypeStruct((batch_size, feat), const.dtype),
        grid_spec=pltpu.PrefetchScalarGridSpec(
            num_scalar_prefetch=0,
            grid=grid,
            in_specs=[
                # Same (tiny) constant tile for every batch-block step.
                pl.BlockSpec((1, feat), lambda b: (0, 0)),
            ],
            out_specs=pl.BlockSpec((nb, feat), lambda b: (b, 0)),
        ),
        compiler_params=pltpu.CompilerParams(
            # Independent batch blocks -> shard across TensorCores (v7x).
            dimension_semantics=("parallel",),
        ),
    )(const_flat)

    # Free metadata reshape back to the NCHW layout.
    return out_flat.reshape((batch_size, *out_sizes))


class ConstantPallas:
    """JAX/Pallas equivalent of the PyTorch `Constant` module."""

    def __init__(self, output_sizes, key):
        self.output_sizes = tuple(output_sizes)
        # reset_parameters(): uniform_(-1, 1), done deterministically here.
        self.const = jax.random.uniform(
            key, (1, *self.output_sizes), dtype=jnp.float32,
            minval=-1.0, maxval=1.0)

    def __call__(self, inp):
        return constant_forward(self.const, inp.shape[0])


if __name__ == "__main__":
    key = jax.random.PRNGKey(0)
    k_param, k_inp = jax.random.split(key)

    output_sizes = (4, 16, 16)        # (C, H, W); F = 1024 lanes (lane-dense)
    batch = 2

    module = ConstantPallas(output_sizes, k_param)

    # `inp` only contributes its batch dimension, as in the PyTorch module.
    inp = jax.random.normal(k_inp, (batch, 3, 8, 8), dtype=jnp.float32)

    out = module(inp)
    out = jax.block_until_ready(out)

    # Reference check: expand == broadcast along batch.
    ref = jnp.broadcast_to(module.const, (batch, *output_sizes))
    assert out.shape == (batch, *output_sizes), out.shape
    assert jnp.allclose(out, ref), "mismatch vs. reference broadcast"

    print("KERNEL_OK")
</pallas_src>

<mosaic_0001>
module attributes {stable_mosaic.version = 11 : i64} {
  func.func @_constant_kernel(%arg0: i32, %arg1: memref<1x1024xf32, #tpu.memory_space<vmem>>, %arg2: memref<2x1024xf32, #tpu.memory_space<vmem>>) attributes {dimension_semantics = [#tpu.dimension_semantics<parallel>], iteration_bounds = array<i64: 1>, scalar_prefetch = 0 : i64, scratch_operands = 0 : i64, tpu.core_type = #tpu.core_type<tc>, window_params = [{pipeline_mode = #tpu.pipeline_mode<synchronous>, transform_indices = @transform_0, window_bounds = array<i64: 1, 1024>}, {transform_indices = @transform_1, window_bounds = array<i64: 2, 1024>}]} {
    %c0 = arith.constant 0 : index
    %c0_0 = arith.constant 0 : index
    %0 = vector.load %arg1[%c0, %c0_0] : memref<1x1024xf32, #tpu.memory_space<vmem>>, vector<1x1024xf32>
    %1 = vector.shape_cast %0 : vector<1x1024xf32> to vector<1x1024xf32>
    %2 = vector.broadcast %1 : vector<1x1024xf32> to vector<2x1024xf32>
    %c0_1 = arith.constant 0 : index
    %c0_2 = arith.constant 0 : index
    %3 = vector.load %arg2[%c0_1, %c0_2] : memref<2x1024xf32, #tpu.memory_space<vmem>>, vector<2x1024xf32>
    tpu.vector_store %arg2[%c0_1, %c0_2], %2 {strides = array<i32>} : memref<2x1024xf32, #tpu.memory_space<vmem>>, vector<2x1024xf32>,
    return
  }
  func.func @transform_0(%arg0: i32) -> (i32, i32) {
    %c0_i32 = arith.constant 0 : i32
    %c0_i32_0 = arith.constant 0 : i32
    %c0_i32_1 = arith.constant 0 : i32
    return %c0_i32, %c0_i32_0 : i32, i32
  }
  func.func @transform_1(%arg0: i32) -> (i32, i32) {
    %c0_i32 = arith.constant 0 : i32
    %c0_i32_0 = arith.constant 0 : i32
    return %arg0, %c0_i32 : i32, i32
  }
}

</mosaic_0001>

<bundles_post_ra>
// kernel: tpu_custom_call.1
= control target key start
LH: loop header
LB: loop body
LE: loop exit
PB: predicated region body
PF: predicated region fallthrough
CT: control target
= control target key end

     0   :  { %6 = vsyncpa [#allocation3], 0  ;;  %s174_s0 = inlined_call_operand.hbm [shape: f32[1,1024], index: 0, kind: input, shape index: {}]   ;;  %s175_s1 = inlined_call_operand.hbm [shape: f32[2,1024], index: 1, kind: output, shape index: {}]  }
   0x1   :  { %7 = vsyncpa [#allocation4], 0  ;;  %s155_s6 = smov [#allocation2]  }
   0x2   :  { %s14_s7 = sshll.u32 %s155_s6, 4  ;;  %s15_s7 = int_to_ptr.vmem [resolvable:$true] %s14_s7 }
   0x3   :  { %s119_s8 = scalar_lea.vmem %s15_s7, 128  ;;  %p124_p1 = scmp.lt.s32.totalorder %s15_s7, %s15_s7 }
   0x4   :  { %p120_p0 = scmp.ne.s32.totalorder %s15_s7, %s119_s8  ;;  %p125_p2 = scmp.lt.s32.totalorder %s119_s8, %s119_s8 }
   0x6   :  { %p126_p3 = por %p125_p2, %p124_p1 }
   0x8   :  { %p127_p4 = pnand %p126_p3, %p120_p0 }
   0xa   :  { %130 = shalt.err (!%p127_p4)
}
   0xb   :  { %17 = dma.hbm_to_vmem [thread:$0]  %s174_s0, 128, %s15_s7, [#allocation3]  }
   0xc   :  { %151 = dma.done.wait [#allocation3], 128  }
   0xd   :  { %152 = vsyncadd [#allocation3], 4294967168  ;;  %v23_v0 = vlaneseq  ;;  %v156_v1 = vmov 1983009808   ;;  %v21_v13 = vld [vmem:[#allocation2] sm:$0xff]  ;;  %s157_s0 = smov [#allocation5]  }
   0xe   :  { %v58_v2 = vunpack.c.l.s4 %v156_v1  ;;  %s99_s11 = sshll.u32 %s157_s0, 4  ;;  %s100_s11 = int_to_ptr.vmem [resolvable:$true] %s99_s11 }
   0xf   :  { %v24_v3 = vshrl.u32 %v23_v0, 7  ;;  %s131_s12 = scalar_lea.vmem %s100_s11, 256  ;;  %p136_p6 = scmp.lt.s32.totalorder %s100_s11, %s100_s11 }
  0x10   :  { %v59_v4 = vunpack.c.0.s8 %v58_v2  ;;  %p132_p5 = scmp.ne.s32.totalorder %s100_s11, %s131_s12  ;;  %p137_p7 = scmp.lt.s32.totalorder %s131_s12, %s131_s12 }
  0x11   :  { %v25_v5 = vsub.s32 0, %v24_v3  ;;  %v29_v6 = vsub.s32 1, %v24_v3  ;;  %v33_v7 = vsub.s32 2, %v24_v3  ;;  %v37_v8 = vsub.s32 3, %v24_v3 }
  0x12   :  { %v41_v9 = vsub.s32 4, %v24_v3  ;;  %v45_v10 = vsub.s32 5, %v24_v3  ;;  %v49_v11 = vsub.s32 6, %v24_v3  ;;  %v53_v12 = vsub.s32 7, %v24_v3  ;;  %p138_p8 = por %p137_p7, %p136_p6 }
  0x13   :  { %v62_v14 = vsub.s32 %v59_v4, %v24_v3  ;;  %v26_v15 = vrot.slane %v21_v13, %v25_v5  ;;  %v30_v16 = vrot.slane %v21_v13, %v29_v6  ;;  %v34_v17 = vrot.slane %v21_v13, %v33_v7 }
  0x14   :  { %v38_v18 = vrot.slane %v21_v13, %v37_v8  ;;  %v42_v19 = vrot.slane %v21_v13, %v41_v9  ;;  %v46_v20 = vrot.slane %v21_v13, %v45_v10  ;;  %v50_v21 = vrot.slane %v21_v13, %v49_v11  ;;  %p139_p9 = pnand %p138_p8, %p132_p5 }
  0x15   :  { %v54_v22 = vrot.slane %v21_v13, %v53_v12  ;;  %v55_v23 = vcombine.low %v26_v15, %v30_v16 }
  0x16   :  { %v56_v24 = vcombine.low %v34_v17, %v38_v18  ;;  %v72_v25 = vcombine.low %v42_v19, %v46_v20 }
  0x17   :  { %v73_v26 = vcombine.low %v50_v21, %v54_v22  ;;  %v63_v27 = vrot.slane %v55_v23, %v62_v14 }
  0x18   :  { %v70_v28 = vrot.slane %v56_v24, %v62_v14  ;;  %v80_v29 = vrot.slane %v72_v25, %v62_v14 }
  0x19   :  { %v87_v30 = vrot.slane %v73_v26, %v62_v14 }
  0x1a   :  { %v71_v31 = vcombine.low %v63_v27, %v70_v28 }
  0x1b   :  { %v88_v32 = vcombine.low %v80_v29, %v87_v30 }
  0x1c   :  { %91 = vst [vmem:[#allocation5] sm:$0xff] %v71_v31 }
  0x1d   :  { %92 = vst [vmem:[#allocation5 + $0x8] sm:$0xff] %v88_v32 }
  0x1e   :  { %142 = shalt.err (!%p139_p9)
}
  0x1f   :  { %102 = dma.vmem_to_hbm [thread:$0]  %s100_s11, 256, %s175_s1, [#allocation4]  }
  0x20   :  { %153 = dma.done.wait [#allocation4], 256  }
  0x21   :  { %154 = vsyncadd [#allocation4], 4294967040 }
  0x22   :  { %106 = vsyncpa [#allocation3], 1 }
  0x23   :  { %107 = vsyncpa [#allocation4], 1 }

</bundles_post_ra>
